<compile_context>
chip_gen: v7x
topology: tpu7x:2x2x1
jax: 0.10.0
libtpu: 0.0.40
codegen_flags: <defaults>
</compile_context>

<pallas_src>
import functools

import jax
import jax.numpy as jnp
import numpy as np
from jax import lax
from jax.experimental import pallas as pl
from jax.experimental.pallas import tpu as pltpu


def _make_corr1d_kernel(stride: int, d_chunk: int, sh: int, unroll: int):
    """Kernel body for one (batch, H-tile, disparity-chunk) grid step.

    fl_ref / fr_ref : (1, c, TH, Wp) VMEM tiles (resident across the dc axis)
    o_ref           : (1, d_chunk, TH, Wp) VMEM tile
    """

    def kernel(fl_ref, fr_ref, o_ref):
        _, c, th, wp = fl_ref.shape
        f32 = jnp.float32

        dc = pl.program_id(2)
        base_disp = dc * d_chunk                      # first disparity of this chunk
        # Element shift of the chunk base, reduced mod Wp so every individual
        # roll amount is legal (roll composition is exact modulo Wp).
        base_shift = lax.rem(base_disp * stride, wp)

        def strip_body(s):
            # Strip the H tile into `sh`-sublane strips so the live f32
            # accumulator set stays at d_chunk * sh * Wp * 4 bytes.
            if isinstance(s, int):
                row0 = s * sh
            else:
                row0 = pl.multiple_of(s * sh, sh)

            def chan_body(ch, accs):
                # Load each channel strip once and reuse it for every disparity
                # in the chunk; multiply in f32 (reference parity, v5e-friendly).
                fl_c = fl_ref[0, ch, pl.ds(row0, sh), :].astype(f32)
                fr_c = fr_ref[0, ch, pl.ds(row0, sh), :].astype(f32)
                # One dynamic roll for the chunk base (XLU), static rolls within.
                fr_base = pltpu.roll(fr_c, base_shift, axis=1)
                new = []
                for j in range(d_chunk):
                    off = (j * stride) % wp
                    fr_j = fr_base if off == 0 else pltpu.roll(fr_base, off, axis=1)
                    new.append(accs[j] + fl_c * fr_j)
                return tuple(new)

            init = tuple(jnp.zeros((sh, wp), f32) for _ in range(d_chunk))
            accs = lax.fori_loop(0, c, chan_body, init, unroll=unroll)

            # Store phase: zero the lanes left of the shift (this also kills the
            # roll wrap-around).  The iota is recomputed per strip (cheap VPU
            # filler) instead of being held live through the hot loop.
            lane = lax.broadcasted_iota(jnp.int32, (sh, wp), 1)
            for j in range(d_chunk):
                shift = (base_disp + j) * stride
                vals = jnp.where(lane >= shift, accs[j], 0.0)
                o_ref[0, j, pl.ds(row0, sh), :] = vals.astype(o_ref.dtype)

        n_strips = th // sh
        if n_strips == 1:
            strip_body(0)                  # static slices, no loop overhead
        else:
            pl.loop(0, n_strips)(strip_body)

    return kernel


def _vmem_capacity_bytes() -> int:
    """Physical VMEM per core; conservative (v7x-sized) fallback if unknown."""
    try:
        return int(pltpu.get_tpu_info().vmem_capacity_bytes)
    except Exception:
        return 64 * 1024 * 1024


def _pick_tile_h(hp: int, align: int, per_row_bytes: int, budget_bytes: int,
                 parallel_steps_other: int) -> int:
    """Largest H tile (multiple of `align`, dividing hp) that fits the budget,
    then shrunk if needed so the parallel grid axes give >= 4 steps (megacore)."""
    cands = sorted({t for t in range(align, hp + 1, align) if hp % t == 0},
                   reverse=True)
    th = next((t for t in cands if t * per_row_bytes <= budget_bytes), cands[-1])
    while parallel_steps_other * (hp // th) < 4:
        smaller = [t for t in cands if t < th]
        if not smaller:
            break
        th = smaller[0]
    return th


@functools.partial(jax.jit, static_argnames=("D", "stride", "kernel_size"))
def corr1d(fL, fR, *, D: int = 1, stride: int = 1, kernel_size: int = 1):
    assert fL.shape == fR.shape and fL.dtype == fR.dtype
    assert D >= 1 and stride >= 1
    bn, c, h, w = fL.shape
    dtype = fL.dtype
    itemsize = jnp.dtype(dtype).itemsize

    # ---- static planning (trace time) --------------------------------------
    # Lane axis (W) padded to a multiple of 128: lane-dense loads/rolls/stores.
    wp = ((w + 127) // 128) * 128
    # Sublane axis (H) padded to the dtype-native sublane multiple so strips
    # and blocks never straddle packed rows.
    align = 8 * max(1, 4 // itemsize)          # f32: 8, bf16: 16, int8: 32
    hp = ((h + align - 1) // align) * align
    sh = align                                 # accumulator strip height

    # Only the prefix of disparity planes with i*stride < w is ever nonzero
    # (plane 0 is always active); the all-zero tail is emitted in the wrapper.
    d_active = max(1, min(D, pl.cdiv(w, stride)))

    # Disparities per grid step, bounded so the live accumulator set
    # (d_chunk * sh * wp * 4 bytes) stays within ~24-32 vregs.
    d_chunk = max(1, min(d_active, (96 * 1024) // (sh * wp * 4), 16))
    n_dc = pl.cdiv(d_active, d_chunk)
    d_pad = n_dc * d_chunk

    # Channel-loop unroll tied to the remaining vreg headroom (accumulators +
    # ~3 long-lived (sh, wp) f32 temporaries per unrolled iteration).
    acc_bytes = d_chunk * sh * wp * 4
    temps_per_iter = 3 * sh * wp * 4
    unroll = int(max(1, min(4, c, (200 * 1024 - acc_bytes) // temps_per_iter)))

    # Generation-aware VMEM budget (v5e/v6e: 128 MiB physical, v7x: 64 MiB).
    vmem_cap = _vmem_capacity_bytes()
    budget = (vmem_cap * 3) // 8
    vmem_limit = (vmem_cap * 3) // 4

    # Double-buffered per-H-row footprint: 2 inputs + one d_chunk-plane output.
    per_row = (4 * c * itemsize + 2 * d_chunk * itemsize) * wp
    th = _pick_tile_h(hp, align, per_row, budget, bn)

    # ---- pad inputs ---------------------------------------------------------
    if hp != h or wp != w:
        pad_cfg = [(0, 0), (0, 0), (0, hp - h), (0, wp - w)]
        fLp = jnp.pad(fL, pad_cfg)
        fRp = jnp.pad(fR, pad_cfg)
    else:
        fLp, fRp = fL, fR

    out = pl.pallas_call(
        _make_corr1d_kernel(stride, d_chunk, sh, unroll),
        out_shape=jax.ShapeDtypeStruct((bn, d_pad, hp, wp), dtype),
        grid_spec=pltpu.PrefetchScalarGridSpec(
            num_scalar_prefetch=0,
            grid=(bn, hp // th, n_dc),
            in_specs=[
                # Independent of the dc axis -> input tiles stay resident in
                # VMEM across all disparity chunks of an H tile (no re-DMA).
                pl.BlockSpec((1, c, th, wp), lambda b, hi, dc: (b, 0, hi, 0)),
                pl.BlockSpec((1, c, th, wp), lambda b, hi, dc: (b, 0, hi, 0)),
            ],
            out_specs=pl.BlockSpec((1, d_chunk, th, wp),
                                   lambda b, hi, dc: (b, dc, hi, 0)),
        ),
        compiler_params=pltpu.CompilerParams(
            dimension_semantics=("parallel", "parallel", "arbitrary"),
            vmem_limit_bytes=vmem_limit,
        ),
    )(fLp, fRp)

    # Strip padding and re-attach the all-zero disparity tail (if any).
    out = out[:, :d_active, :h, :w]
    if d_active < D:
        out = jnp.concatenate(
            [out, jnp.zeros((bn, D - d_active, h, w), dtype)], axis=1)

    if kernel_size > 1:
        # TODO(synk): fold the AvgPool2d smoothing into the Pallas kernel using
        # halo rows on the H tiles to avoid a second full pass over the volume.
        assert kernel_size % 2 == 1
        pad = kernel_size // 2
        summed = lax.reduce_window(
            out,
            jnp.array(0.0, out.dtype),
            lax.add,
            window_dimensions=(1, 1, kernel_size, kernel_size),
            window_strides=(1, 1, 1, 1),
            padding=[(0, 0), (0, 0), (pad, pad), (pad, pad)],
        )
        out = summed / (kernel_size * kernel_size)
    return out


def corr1d_reference(fL, fR, *, D, stride, kernel_size=1):
    """Pure-JAX reference mirroring the PyTorch forward (f32 accumulation)."""
    bn, c, h, w = fL.shape
    f32 = jnp.float32
    corr = jnp.zeros((bn, D, h, w), f32)
    corr = corr.at[:, 0].set(jnp.sum(fL.astype(f32) * fR.astype(f32), axis=1))
    for i in range(1, D):
        if i >= w:
            break
        idx = i * stride
        if idx <= 0 or idx >= w:
            continue
        corr = corr.at[:, i, :, idx:].set(
            jnp.sum(fL[:, :, :, idx:].astype(f32) * fR[:, :, :, : w - idx].astype(f32),
                    axis=1)
        )
    corr = corr.astype(fL.dtype)
    if kernel_size > 1:
        assert kernel_size % 2 == 1
        p = kernel_size // 2
        padded = jnp.pad(corr, ((0, 0), (0, 0), (p, p), (p, p)))
        acc = jnp.zeros_like(corr)
        for dy in range(kernel_size):
            for dx in range(kernel_size):
                acc = acc + padded[:, :, dy:dy + h, dx:dx + w]
        corr = acc / (kernel_size * kernel_size)
    return corr


if __name__ == "__main__":
    key = jax.random.PRNGKey(0)
    kL, kR = jax.random.split(key)

    bn, c, h, w = 2, 4, 16, 16
    fL = jax.random.normal(kL, (bn, c, h, w), dtype=jnp.float32)
    fR = jax.random.normal(kR, (bn, c, h, w), dtype=jnp.float32)

    # Default Corr1d configuration (no smoothing).
    out = jax.block_until_ready(corr1d(fL, fR, D=4, stride=1, kernel_size=1))
    ref = corr1d_reference(fL, fR, D=4, stride=1, kernel_size=1)
    np.testing.assert_allclose(np.asarray(out), np.asarray(ref), rtol=1e-5, atol=1e-5)

    # Edge cases: stride > 1 pushes some disparity planes past the image width
    # (those planes must stay all-zero) plus the AvgPool2d smoothing branch.
    out2 = jax.block_until_ready(corr1d(fL, fR, D=10, stride=2, kernel_size=3))
    ref2 = corr1d_reference(fL, fR, D=10, stride=2, kernel_size=3)
    np.testing.assert_allclose(np.asarray(out2), np.asarray(ref2), rtol=1e-5, atol=1e-5)

    # bf16 smoke test (kernel multiplies/accumulates in f32; loose tolerance
    # only covers bf16 output rounding).
    fLb, fRb = fL.astype(jnp.bfloat16), fR.astype(jnp.bfloat16)
    out3 = jax.block_until_ready(corr1d(fLb, fRb, D=4, stride=1, kernel_size=1))
    ref3 = corr1d_reference(fLb, fRb, D=4, stride=1, kernel_size=1)
    np.testing.assert_allclose(np.asarray(out3.astype(jnp.float32)),
                               np.asarray(ref3.astype(jnp.float32)),
                               rtol=5e-2, atol=1e-1)

    print("KERNEL_OK")
</pallas_src>

<mosaic_0001>
module attributes {stable_mosaic.version = 11 : i64} {
  func.func @kernel(%arg0: i32, %arg1: i32, %arg2: i32, %arg3: memref<1x4x8x128xf32, #tpu.memory_space<vmem>>, %arg4: memref<1x4x8x128xf32, #tpu.memory_space<vmem>>, %arg5: memref<1x4x8x128xf32, #tpu.memory_space<vmem>>) attributes {dimension_semantics = [#tpu.dimension_semantics<parallel>, #tpu.dimension_semantics<parallel>, #tpu.dimension_semantics<arbitrary>], iteration_bounds = array<i64: 2, 2, 1>, scalar_prefetch = 0 : i64, scratch_operands = 0 : i64, tpu.core_type = #tpu.core_type<tc>, window_params = [{transform_indices = @transform_0, window_bounds = array<i64: 1, 4, 8, 128>}, {transform_indices = @transform_1, window_bounds = array<i64: 1, 4, 8, 128>}, {transform_indices = @transform_2, window_bounds = array<i64: 1, 4, 8, 128>}]} {
    %c4_i32 = arith.constant 4 : i32
    %0 = arith.muli %arg2, %c4_i32 : i32
    %c1_i32 = arith.constant 1 : i32
    %1 = arith.muli %0, %c1_i32 : i32
    %c128_i32 = arith.constant 128 : i32
    %2 = arith.remsi %1, %c128_i32 : i32
    %cst = arith.constant 0.000000e+00 : f32
    %3 = vector.broadcast %cst : f32 to vector<8x128xf32>
    %cst_0 = arith.constant 0.000000e+00 : f32
    %4 = vector.broadcast %cst_0 : f32 to vector<8x128xf32>
    %cst_1 = arith.constant 0.000000e+00 : f32
    %5 = vector.broadcast %cst_1 : f32 to vector<8x128xf32>
    %cst_2 = arith.constant 0.000000e+00 : f32
    %6 = vector.broadcast %cst_2 : f32 to vector<8x128xf32>
    %c0_i32 = arith.constant 0 : i32
    %c0 = arith.constant 0 : index
    %7 = arith.index_cast %c0_i32 : i32 to index
    %c0_3 = arith.constant 0 : index
    %c0_4 = arith.constant 0 : index
    %8 = vector.load %arg3[%c0, %7, %c0_3, %c0_4] : memref<1x4x8x128xf32, #tpu.memory_space<vmem>>, vector<1x1x8x128xf32>
    %9 = vector.shape_cast %8 : vector<1x1x8x128xf32> to vector<8x128xf32>
    %c0_5 = arith.constant 0 : index
    %10 = arith.index_cast %c0_i32 : i32 to index
    %c0_6 = arith.constant 0 : index
    %c0_7 = arith.constant 0 : index
    %11 = vector.load %arg4[%c0_5, %10, %c0_6, %c0_7] : memref<1x4x8x128xf32, #tpu.memory_space<vmem>>, vector<1x1x8x128xf32>
    %12 = vector.shape_cast %11 : vector<1x1x8x128xf32> to vector<8x128xf32>
    %13 = tpu.dynamic_rotate %12 by %2 dim 1 : vector<8x128xf32>, i32 -> vector<8x128xf32>
    %14 = arith.mulf %9, %13 : vector<8x128xf32>
    %15 = arith.addf %3, %14 : vector<8x128xf32>
    %c1_i32_8 = arith.constant 1 : i32
    %16 = tpu.dynamic_rotate %13 by %c1_i32_8 dim 1 : vector<8x128xf32>, i32 -> vector<8x128xf32>
    %17 = arith.mulf %9, %16 : vector<8x128xf32>
    %18 = arith.addf %4, %17 : vector<8x128xf32>
    %c2_i32 = arith.constant 2 : i32
    %19 = tpu.dynamic_rotate %13 by %c2_i32 dim 1 : vector<8x128xf32>, i32 -> vector<8x128xf32>
    %20 = arith.mulf %9, %19 : vector<8x128xf32>
    %21 = arith.addf %5, %20 : vector<8x128xf32>
    %c3_i32 = arith.constant 3 : i32
    %22 = tpu.dynamic_rotate %13 by %c3_i32 dim 1 : vector<8x128xf32>, i32 -> vector<8x128xf32>
    %23 = arith.mulf %9, %22 : vector<8x128xf32>
    %24 = arith.addf %6, %23 : vector<8x128xf32>
    %c1_i32_9 = arith.constant 1 : i32
    %c0_10 = arith.constant 0 : index
    %25 = arith.index_cast %c1_i32_9 : i32 to index
    %c0_11 = arith.constant 0 : index
    %c0_12 = arith.constant 0 : index
    %26 = vector.load %arg3[%c0_10, %25, %c0_11, %c0_12] : memref<1x4x8x128xf32, #tpu.memory_space<vmem>>, vector<1x1x8x128xf32>
    %27 = vector.shape_cast %26 : vector<1x1x8x128xf32> to vector<8x128xf32>
    %c0_13 = arith.constant 0 : index
    %28 = arith.index_cast %c1_i32_9 : i32 to index
    %c0_14 = arith.constant 0 : index
    %c0_15 = arith.constant 0 : index
    %29 = vector.load %arg4[%c0_13, %28, %c0_14, %c0_15] : memref<1x4x8x128xf32, #tpu.memory_space<vmem>>, vector<1x1x8x128xf32>
    %30 = vector.shape_cast %29 : vector<1x1x8x128xf32> to vector<8x128xf32>
    %31 = tpu.dynamic_rotate %30 by %2 dim 1 : vector<8x128xf32>, i32 -> vector<8x128xf32>
    %32 = arith.mulf %27, %31 : vector<8x128xf32>
    %33 = arith.addf %15, %32 : vector<8x128xf32>
    %c1_i32_16 = arith.constant 1 : i32
    %34 = tpu.dynamic_rotate %31 by %c1_i32_16 dim 1 : vector<8x128xf32>, i32 -> vector<8x128xf32>
    %35 = arith.mulf %27, %34 : vector<8x128xf32>
    %36 = arith.addf %18, %35 : vector<8x128xf32>
    %c2_i32_17 = arith.constant 2 : i32
    %37 = tpu.dynamic_rotate %31 by %c2_i32_17 dim 1 : vector<8x128xf32>, i32 -> vector<8x128xf32>
    %38 = arith.mulf %27, %37 : vector<8x128xf32>
    %39 = arith.addf %21, %38 : vector<8x128xf32>
    %c3_i32_18 = arith.constant 3 : i32
    %40 = tpu.dynamic_rotate %31 by %c3_i32_18 dim 1 : vector<8x128xf32>, i32 -> vector<8x128xf32>
    %41 = arith.mulf %27, %40 : vector<8x128xf32>
    %42 = arith.addf %24, %41 : vector<8x128xf32>
    %c2_i32_19 = arith.constant 2 : i32
    %c0_20 = arith.constant 0 : index
    %43 = arith.index_cast %c2_i32_19 : i32 to index
    %c0_21 = arith.constant 0 : index
    %c0_22 = arith.constant 0 : index
    %44 = vector.load %arg3[%c0_20, %43, %c0_21, %c0_22] : memref<1x4x8x128xf32, #tpu.memory_space<vmem>>, vector<1x1x8x128xf32>
    %45 = vector.shape_cast %44 : vector<1x1x8x128xf32> to vector<8x128xf32>
    %c0_23 = arith.constant 0 : index
    %46 = arith.index_cast %c2_i32_19 : i32 to index
    %c0_24 = arith.constant 0 : index
    %c0_25 = arith.constant 0 : index
    %47 = vector.load %arg4[%c0_23, %46, %c0_24, %c0_25] : memref<1x4x8x128xf32, #tpu.memory_space<vmem>>, vector<1x1x8x128xf32>
    %48 = vector.shape_cast %47 : vector<1x1x8x128xf32> to vector<8x128xf32>
    %49 = tpu.dynamic_rotate %48 by %2 dim 1 : vector<8x128xf32>, i32 -> vector<8x128xf32>
    %50 = arith.mulf %45, %49 : vector<8x128xf32>
    %51 = arith.addf %33, %50 : vector<8x128xf32>
    %c1_i32_26 = arith.constant 1 : i32
    %52 = tpu.dynamic_rotate %49 by %c1_i32_26 dim 1 : vector<8x128xf32>, i32 -> vector<8x128xf32>
    %53 = arith.mulf %45, %52 : vector<8x128xf32>
    %54 = arith.addf %36, %53 : vector<8x128xf32>
    %c2_i32_27 = arith.constant 2 : i32
    %55 = tpu.dynamic_rotate %49 by %c2_i32_27 dim 1 : vector<8x128xf32>, i32 -> vector<8x128xf32>
    %56 = arith.mulf %45, %55 : vector<8x128xf32>
    %57 = arith.addf %39, %56 : vector<8x128xf32>
    %c3_i32_28 = arith.constant 3 : i32
    %58 = tpu.dynamic_rotate %49 by %c3_i32_28 dim 1 : vector<8x128xf32>, i32 -> vector<8x128xf32>
    %59 = arith.mulf %45, %58 : vector<8x128xf32>
    %60 = arith.addf %42, %59 : vector<8x128xf32>
    %c3_i32_29 = arith.constant 3 : i32
    %c0_30 = arith.constant 0 : index
    %61 = arith.index_cast %c3_i32_29 : i32 to index
    %c0_31 = arith.constant 0 : index
    %c0_32 = arith.constant 0 : index
    %62 = vector.load %arg3[%c0_30, %61, %c0_31, %c0_32] : memref<1x4x8x128xf32, #tpu.memory_space<vmem>>, vector<1x1x8x128xf32>
    %63 = vector.shape_cast %62 : vector<1x1x8x128xf32> to vector<8x128xf32>
    %c0_33 = arith.constant 0 : index
    %64 = arith.index_cast %c3_i32_29 : i32 to index
    %c0_34 = arith.constant 0 : index
    %c0_35 = arith.constant 0 : index
    %65 = vector.load %arg4[%c0_33, %64, %c0_34, %c0_35] : memref<1x4x8x128xf32, #tpu.memory_space<vmem>>, vector<1x1x8x128xf32>
    %66 = vector.shape_cast %65 : vector<1x1x8x128xf32> to vector<8x128xf32>
    %67 = tpu.dynamic_rotate %66 by %2 dim 1 : vector<8x128xf32>, i32 -> vector<8x128xf32>
    %68 = arith.mulf %63, %67 : vector<8x128xf32>
    %69 = arith.addf %51, %68 : vector<8x128xf32>
    %c1_i32_36 = arith.constant 1 : i32
    %70 = tpu.dynamic_rotate %67 by %c1_i32_36 dim 1 : vector<8x128xf32>, i32 -> vector<8x128xf32>
    %71 = arith.mulf %63, %70 : vector<8x128xf32>
    %72 = arith.addf %54, %71 : vector<8x128xf32>
    %c2_i32_37 = arith.constant 2 : i32
    %73 = tpu.dynamic_rotate %67 by %c2_i32_37 dim 1 : vector<8x128xf32>, i32 -> vector<8x128xf32>
    %74 = arith.mulf %63, %73 : vector<8x128xf32>
    %75 = arith.addf %57, %74 : vector<8x128xf32>
    %c3_i32_38 = arith.constant 3 : i32
    %76 = tpu.dynamic_rotate %67 by %c3_i32_38 dim 1 : vector<8x128xf32>, i32 -> vector<8x128xf32>
    %77 = arith.mulf %63, %76 : vector<8x128xf32>
    %78 = arith.addf %60, %77 : vector<8x128xf32>
    %c4_i32_39 = arith.constant 4 : i32
    %79 = tpu.iota {dimensions = array<i32: 1>} : vector<8x128xi32>
    %c0_i32_40 = arith.constant 0 : i32
    %80 = arith.addi %0, %c0_i32_40 : i32
    %c1_i32_41 = arith.constant 1 : i32
    %81 = arith.muli %80, %c1_i32_41 : i32
    %82 = vector.broadcast %81 : i32 to vector<8x128xi32>
    %83 = arith.cmpi sge, %79, %82 : vector<8x128xi32>
    %cst_42 = arith.constant 0.000000e+00 : f32
    %84 = vector.broadcast %cst_42 : f32 to vector<8x128xf32>
    %85 = arith.select %83, %69, %84 : vector<8x128xi1>, vector<8x128xf32>
    %c0_43 = arith.constant 0 : index
    %c0_44 = arith.constant 0 : index
    %c0_45 = arith.constant 0 : index
    %c0_46 = arith.constant 0 : index
    %86 = vector.load %arg5[%c0_43, %c0_44, %c0_45, %c0_46] : memref<1x4x8x128xf32, #tpu.memory_space<vmem>>, vector<1x1x8x128xf32>
    %87 = vector.shape_cast %86 : vector<1x1x8x128xf32> to vector<8x128xf32>
    %88 = vector.shape_cast %85 : vector<8x128xf32> to vector<1x1x8x128xf32>
    tpu.vector_store %arg5[%c0_43, %c0_44, %c0_45, %c0_46], %88 {strides = array<i32>} : memref<1x4x8x128xf32, #tpu.memory_space<vmem>>, vector<1x1x8x128xf32>,
    %c1_i32_47 = arith.constant 1 : i32
    %89 = arith.addi %0, %c1_i32_47 : i32
    %c1_i32_48 = arith.constant 1 : i32
    %90 = arith.muli %89, %c1_i32_48 : i32
    %91 = vector.broadcast %90 : i32 to vector<8x128xi32>
    %92 = arith.cmpi sge, %79, %91 : vector<8x128xi32>
    %cst_49 = arith.constant 0.000000e+00 : f32
    %93 = vector.broadcast %cst_49 : f32 to vector<8x128xf32>
    %94 = arith.select %92, %72, %93 : vector<8x128xi1>, vector<8x128xf32>
    %c0_50 = arith.constant 0 : index
    %c1 = arith.constant 1 : index
    %c0_51 = arith.constant 0 : index
    %c0_52 = arith.constant 0 : index
    %95 = vector.load %arg5[%c0_50, %c1, %c0_51, %c0_52] : memref<1x4x8x128xf32, #tpu.memory_space<vmem>>, vector<1x1x8x128xf32>
    %96 = vector.shape_cast %95 : vector<1x1x8x128xf32> to vector<8x128xf32>
    %97 = vector.shape_cast %94 : vector<8x128xf32> to vector<1x1x8x128xf32>
    tpu.vector_store %arg5[%c0_50, %c1, %c0_51, %c0_52], %97 {strides = array<i32>} : memref<1x4x8x128xf32, #tpu.memory_space<vmem>>, vector<1x1x8x128xf32>,
    %c2_i32_53 = arith.constant 2 : i32
    %98 = arith.addi %0, %c2_i32_53 : i32
    %c1_i32_54 = arith.constant 1 : i32
    %99 = arith.muli %98, %c1_i32_54 : i32
    %100 = vector.broadcast %99 : i32 to vector<8x128xi32>
    %101 = arith.cmpi sge, %79, %100 : vector<8x128xi32>
    %cst_55 = arith.constant 0.000000e+00 : f32
    %102 = vector.broadcast %cst_55 : f32 to vector<8x128xf32>
    %103 = arith.select %101, %75, %102 : vector<8x128xi1>, vector<8x128xf32>
    %c0_56 = arith.constant 0 : index
    %c2 = arith.constant 2 : index
    %c0_57 = arith.constant 0 : index
    %c0_58 = arith.constant 0 : index
    %104 = vector.load %arg5[%c0_56, %c2, %c0_57, %c0_58] : memref<1x4x8x128xf32, #tpu.memory_space<vmem>>, vector<1x1x8x128xf32>
    %105 = vector.shape_cast %104 : vector<1x1x8x128xf32> to vector<8x128xf32>
    %106 = vector.shape_cast %103 : vector<8x128xf32> to vector<1x1x8x128xf32>
    tpu.vector_store %arg5[%c0_56, %c2, %c0_57, %c0_58], %106 {strides = array<i32>} : memref<1x4x8x128xf32, #tpu.memory_space<vmem>>, vector<1x1x8x128xf32>,
    %c3_i32_59 = arith.constant 3 : i32
    %107 = arith.addi %0, %c3_i32_59 : i32
    %c1_i32_60 = arith.constant 1 : i32
    %108 = arith.muli %107, %c1_i32_60 : i32
    %109 = vector.broadcast %108 : i32 to vector<8x128xi32>
    %110 = arith.cmpi sge, %79, %109 : vector<8x128xi32>
    %cst_61 = arith.constant 0.000000e+00 : f32
    %111 = vector.broadcast %cst_61 : f32 to vector<8x128xf32>
    %112 = arith.select %110, %78, %111 : vector<8x128xi1>, vector<8x128xf32>
    %c0_62 = arith.constant 0 : index
    %c3 = arith.constant 3 : index
    %c0_63 = arith.constant 0 : index
    %c0_64 = arith.constant 0 : index
    %113 = vector.load %arg5[%c0_62, %c3, %c0_63, %c0_64] : memref<1x4x8x128xf32, #tpu.memory_space<vmem>>, vector<1x1x8x128xf32>
    %114 = vector.shape_cast %113 : vector<1x1x8x128xf32> to vector<8x128xf32>
    %115 = vector.shape_cast %112 : vector<8x128xf32> to vector<1x1x8x128xf32>
    tpu.vector_store %arg5[%c0_62, %c3, %c0_63, %c0_64], %115 {strides = array<i32>} : memref<1x4x8x128xf32, #tpu.memory_space<vmem>>, vector<1x1x8x128xf32>,
    return
  }
  func.func @transform_0(%arg0: i32, %arg1: i32, %arg2: i32) -> (i32, i32, i32, i32) {
    %c0_i32 = arith.constant 0 : i32
    %c0_i32_0 = arith.constant 0 : i32
    %c0_i32_1 = arith.constant 0 : i32
    return %arg0, %c0_i32, %arg1, %c0_i32_0 : i32, i32, i32, i32
  }
  func.func @transform_1(%arg0: i32, %arg1: i32, %arg2: i32) -> (i32, i32, i32, i32) {
    %c0_i32 = arith.constant 0 : i32
    %c0_i32_0 = arith.constant 0 : i32
    %c0_i32_1 = arith.constant 0 : i32
    return %arg0, %c0_i32, %arg1, %c0_i32_0 : i32, i32, i32, i32
  }
  func.func @transform_2(%arg0: i32, %arg1: i32, %arg2: i32) -> (i32, i32, i32, i32) {
    %c0_i32 = arith.constant 0 : i32
    %c0_i32_0 = arith.constant 0 : i32
    return %arg0, %arg2, %arg1, %c0_i32 : i32, i32, i32, i32
  }
}

</mosaic_0001>

<bundles_post_ra>
// kernel: corr1d.1
= control target key start
LH: loop header
LB: loop body
LE: loop exit
PB: predicated region body
PF: predicated region fallthrough
CT: control target
= control target key end

     0   :  { %7 = vsyncpa [#allocation5], 0  ;;  %s912_s0 = inlined_call_operand.vmem [shape: f32[2,4,16,128], index: 0, kind: input, shape index: {}]   ;;  %s913_s1 = inlined_call_operand.vmem [shape: f32[2,4,16,128], index: 1, kind: input, shape index: {}]   ;;  %s914_s2 = inlined_call_operand.hbm [shape: f32[2,4,16,128], index: 2, kind: output, shape index: {}]  }
   0x1   :  { %9 = vsyncpa [#allocation5 + $0x1], 0  ;;  %s746_s9 = smov 0   ;;  %s748_s10 = smov 0  }
   0x2   :  { %s750_s11 = smov 0   ;;  %s752_s12 = smov 0  }
   0x3   :  { %s754_s13 = smov 0   ;;  %s756_s14 = smov 0  }
   0x4   :  { %s758_s15 = smov 0   ;;  %s760_s16 = smov 0  }
   0x5 LB: > { %s523_s17 = sadd.s32 4294967295, %s722_s16   ;;  %s524_s18 = sadd.s32 4294967294, %s722_s16   ;;  %s722_s16 = sphi %s760_s16, %s15_s16   ;;  %s718_s15 = sphi %s758_s15, %s924_s15   ;;  %s714_s14 = sphi %s756_s14, %s923_s14   ;;  %s710_s13 = sphi %s754_s13, %s922_s13   ;;  %s706_s12 = sphi %s752_s12, %s921_s12   ;;  %s702_s11 = sphi %s750_s11, %s920_s11   ;;  %s698_s10 = sphi %s748_s10, %s919_s10   ;;  %s694_s9 = sphi %s746_s9, %s918_s9  }
   0x6   : > { %s30_s19 = sadd.s32 1, %s714_s14  ;;  %s34_s20 = sadd.s32 1, %s718_s15 }
   0x7   : > { %p32_p0 = scmp.ge.s32.totalorder %s30_s19, 2  ;;  %p50_p1 = scmp.ne.s32.totalorder %s702_s11, %s698_s10 }
   0x8   : > { %p51_p2 = scmp.eq.s32.totalorder %s722_s16, 0  ;;  %p112_p5 = scmp.eq.s32.totalorder %s523_s17, 3 }
   0x9   : > { %s926_s19 = smov (%p32_p0, %s30_s19), 0  ;;  %s928_s20 = smov (!%p32_p0, %s34_s20), %s718_s15 }
   0xa   : > { %s39_s21 = ssub.s32 %s714_s14, %s926_s19  ;;  %p798_p3 = por %p51_p2, %p50_p1 }
   0xb   : > { %p36_p4 = scmp.ge.s32.totalorder %s928_s20, 2  ;;  %p117_p6 = scmp.ne.s32.totalorder %s698_s10, %s694_s9 }
   0xc   : > { %p118_p7 = scmp.eq.s32.totalorder %s524_s18, 3  ;;  %p806_p8 = por %p112_p5, %p50_p1 }
   0xd   : > { %s930_s20 = smov (%p36_p4, %s928_s20), 0  ;;  %s43_s27 = sadd.s32 1, %s702_s11 }
   0xe   : > { %p810_p9 = por %p118_p7, %p117_p6  ;;  %s38_s25 = ssub.s32 %s718_s15, %s930_s20 }
   0xf   : > { %s40_s26 = sor.u32 %s39_s21, %s38_s25  ;;  %p526_p11 = scmp.ge.s32.totalorder %s722_s16, 4 }
  0x10   : > { %p41_p10 = scmp.eq.s32.totalorder %s40_s26, 0 }
  0x11   : > { %134 = sbr.rel (%p526_p11) target bundleno = 40 (0x28), region = 16 }
  0x12   : > { %s818_s28 = scalar_select %p41_p10, %s702_s11, %s43_s27  }
  0x18   : > { %137 = sbr.rel (!%p798_p3) target bundleno = 32 (0x20), region = 20  ;;  %s139_s29 = sand.u32 (%p798_p3), 1, %s702_s11  }
  0x19   : > { %s528_s30 = sshll.u32 (%p798_p3), %s718_s15, 3  ;;  %s527_s3 = sshll.u32 (%p798_p3), %s139_s29, 5 }
  0x1a   : > { %s143_s4 = sadd.s32 (%p798_p3), %s714_s14, %s528_s30  ;;  %s141_s17 = scalar_lea.vmem (%p798_p3), [#allocation2], %s527_s3 }
  0x1b   : > { %s529_s5 = sshll.u32 (%p798_p3), %s143_s4, 3 }
  0x1c   : > { %s145_s8 = scalar_lea.vmem (%p798_p3), %s912_s0, %s529_s5 }
  0x1d   : > { %v179_v0 = vld [vmem:[%s145_s8] sm:$0xff] (%p798_p3)  ;;  %v181_v1 = vld [vmem:[%s145_s8 + $0x10] sm:$0xff] (%p798_p3) }
  0x1e   : > { %v183_v2 = vld [vmem:[%s145_s8 + $0x20] sm:$0xff] (%p798_p3)  ;;  %180 = vst [vmem:[%s141_s17] sm:$0xff] (%p798_p3), %v179_v0  ;;  %182 = vst [vmem:[%s141_s17 + $0x8] sm:$0xff] (%p798_p3), %v181_v1  ;;  %v185_v3 = vld [vmem:[%s145_s8 + $0x30] sm:$0xff] (%p798_p3) }
  0x1f   : > { %184 = vst [vmem:[%s141_s17 + $0x10] sm:$0xff] %v183_v2  ;;  %186 = vst [vmem:[%s141_s17 + $0x18] sm:$0xff] %v185_v3 }
  0x20 PF: > { %192 = sbr.rel (!%p798_p3) target bundleno = 40 (0x28), region = 58  ;;  %s194_s18 = sand.u32 (%p798_p3), 1, %s702_s11  }
  0x21   : > { %s531_s21 = sshll.u32 (%p798_p3), %s718_s15, 3  ;;  %s530_s25 = sshll.u32 (%p798_p3), %s194_s18, 5 }
  0x22   : > { %s198_s26 = sadd.s32 (%p798_p3), %s714_s14, %s531_s21  ;;  %s196_s4 = scalar_lea.vmem (%p798_p3), [#allocation3], %s530_s25 }
  0x23   : > { %s532_s27 = sshll.u32 (%p798_p3), %s198_s26, 3 }
  0x24   : > { %s200_s3 = scalar_lea.vmem (%p798_p3), %s913_s1, %s532_s27 }
  0x25   : > { %v234_v4 = vld [vmem:[%s200_s3] sm:$0xff] (%p798_p3)  ;;  %v236_v5 = vld [vmem:[%s200_s3 + $0x10] sm:$0xff] (%p798_p3) }
  0x26   : > { %v238_v6 = vld [vmem:[%s200_s3 + $0x20] sm:$0xff] (%p798_p3)  ;;  %235 = vst [vmem:[%s196_s4] sm:$0xff] (%p798_p3), %v234_v4  ;;  %237 = vst [vmem:[%s196_s4 + $0x8] sm:$0xff] (%p798_p3), %v236_v5  ;;  %v240_v7 = vld [vmem:[%s200_s3 + $0x30] sm:$0xff] (%p798_p3) }
  0x27   : > { %239 = vst [vmem:[%s196_s4 + $0x10] sm:$0xff] %v238_v6  ;;  %241 = vst [vmem:[%s196_s4 + $0x18] sm:$0xff] %v240_v7 }
  0x28 PF: > { %p533_p12 = scmp.ge.s32.totalorder %s722_s16, 1  ;;  %p246_p13 = scmp.lt.s32.totalorder %s722_s16, 5 }
  0x2a   : > { %p247_p0 = pnand %p533_p12, %p246_p13 }
  0x2b   : > { %s253_s22 = sand.u32 (!%p247_p0), 1, %s698_s10   ;;  %s724_s7 = smov (!%p247_p0), 3   ;;  %v373_v29 = vlaneseq (!%p247_p0) }
  0x2c   : > { %250 = sbr.rel (%p247_p0) target bundleno = 203 (0xcb), region = 96  ;;  %s534_s5 = sshll.u32 (!%p247_p0), %s253_s22, 5 }
  0x2d   : > { %s262_s6 = scalar_lea.vmem (!%p247_p0), [#allocation3], %s534_s5  ;;  %s725_s8 = smov (!%p247_p0), 1   ;;  %v374_v36 = vand.u32 (!%p247_p0), 127, %v373_v29 }
  0x2e   : > { %v294_v8 = vld [vmem:[%s262_s6] sm:$0xff] (!%p247_p0)  ;;  %v538_v9 = vld [vmem:[%s262_s6 + $0x8] sm:$0xff] (!%p247_p0)  ;;  %s255_s17 = scalar_lea.vmem (!%p247_p0), [#allocation2], %s534_s5  ;;  %v540_v11 = vld [vmem:[%s262_s6 + $0x10] sm:$0xff] (!%p247_p0)  ;;  %s726_s18 = smov (!%p247_p0), 2  }
  0x2f   : > { %309 = vrot.lane.b32.xlu1 (!%p247_p0), %v294_v8, %s724_s7  ;;  %301 = vrot.lane.b32.xlu0 (!%p247_p0), %v294_v8, %s725_s8  ;;  %v293_v10 = vld [vmem:[%s255_s17] sm:$0xff] (!%p247_p0)  ;;  %v537_v13 = vld [vmem:[%s255_s17 + $0x8] sm:$0xff] (!%p247_p0)  ;;  %s842_s21 = scalar_lea.vmem (!%p247_p0), [#allocation4], %s534_s5  ;;  %s547_s25 = sshll.u32 (!%p247_p0), %s710_s13, 3  ;;  %vm381_vm0 = vcmp.ge.s32.totalorder (!%p247_p0), %v374_v36, 1  ;;  %vm393_vm1 = vcmp.ge.s32.totalorder (!%p247_p0), %v374_v36, 3 }
  0x30   : > { %v299_v12 = vmul.f32 (!%p247_p0), %v294_v8, %v293_v10  ;;  %v539_v14 = vld [vmem:[%s255_s17 + $0x10] sm:$0xff] (!%p247_p0)  ;;  %v319_v15 = vmul.f32 (!%p247_p0), %v538_v9, %v537_v13  ;;  %v542_v17 = vld [vmem:[%s262_s6 + $0x18] sm:$0xff] (!%p247_p0)  ;;  %s412_s26 = sadd.s32 (!%p247_p0), %s706_s12, %s547_s25  ;;  %s415_s27 = sshll.u32 (!%p247_p0), %s842_s21, 4  ;;  %vm387_vm2 = vcmp.ge.s32.totalorder (!%p247_p0), %v374_v36, 2  ;;  %s848_s27 = int_to_ptr.vmem [resolvable:$true] %s415_s27 }
  0x31   : > { %v339_v16 = vmul.f32 (!%p247_p0), %v540_v11, %v539_v14  ;;  %v541_v18 = vld [vmem:[%s255_s17 + $0x18] sm:$0xff] (!%p247_p0)  ;;  %s548_s13 = sshll.u32 (!%p247_p0), %s412_s26, 7  ;;  %s860_s3 = scalar_lea.sflag (!%p247_p0), [#allocation5], %s253_s22 }
  0x32   : > { %v320_v19 = vadd.f32 (!%p247_p0), %v319_v15, %v299_v12  ;;  %v359_v20 = vmul.f32 (!%p247_p0), %v542_v17, %v541_v18  ;;  %s854_s30 = scalar_lea.hbm (!%p247_p0), %s914_s2, %s548_s13  ;;  %s628_s4 = scalar_lea.vmem (!%p247_p0), %s848_s27, 512 }
  0x33   : > { %321 = vrot.lane.b32.xlu1 %v538_v9, %s725_s8  ;;  %305 = vrot.lane.b32.xlu0 %v294_v8, %s726_s18  ;;  %p629_p1 = scmp.ne.s32.totalorder %s848_s27, %s628_s4  ;;  %s727_s5 = smov [#allocation4]  }
  0x34   : > { %v340_v21 = vadd.f32 %v339_v16, %v320_v19  ;;  %s632_s6 = sshll.u32 %s727_s5, 4  ;;  %s633_s6 = int_to_ptr.vmem [resolvable:$false] %s632_s6 }
  0x35   : > { %p630_p2 = pnand %p629_p1, %p806_p8  ;;  %p635_p4 = scmp.lt.s32.totalorder %s848_s27, %s633_s6 }
  0x36   : > { %v360_v22 = vadd.f32 %v359_v20, %v340_v21 }
  0x37   : > { %329 = vrot.lane.b32.xlu1 %v538_v9, %s724_s7  ;;  %325 = vrot.lane.b32.xlu0 %v538_v9, %s726_s18  ;;  %p631_p3 = pneg %p630_p2 }
  0x38   : > { %378 = vst [vmem:[%s842_s21] sm:$0xff] %v360_v22 }
  0x3b   : > { %345 = vrot.lane.b32.xlu1 %v540_v11, %s726_s18  ;;  %341 = vrot.lane.b32.xlu0 %v540_v11, %s725_s8 }
  0x3f   : > { %361 = vrot.lane.b32.xlu1 %v542_v17, %s725_s8  ;;  %349 = vrot.lane.b32.xlu0 %v540_v11, %s724_s7 }
  0x43   : > { %369 = vrot.lane.b32.xlu1 %v542_v17, %s724_s7  ;;  %365 = vrot.lane.b32.xlu0 %v542_v17, %s726_s18  ;;  %s634_s7 = scalar_lea.vmem %s633_s6, 1024 }
  0x44   : > { %p636_p5 = scmp.lt.s32.totalorder %s634_s7, %s628_s4 }
  0x46   : > { %p637_p6 = por %p636_p5, %p635_p4 }
  0x48   : > { %p638_p7 = pnand %p637_p6, %p631_p3 }
  0xa1   : > { %v310_v23 = vpop.permute.xlu1 %309  ;;  %v302_v24 = vpop.permute.xlu0 %301 }
  0xa2   : > { %v303_v33 = vmul.f32 %v302_v24, %v293_v10  ;;  %v311_v43 = vmul.f32 %v310_v23, %v293_v10 }
  0xa5   : > { %v322_v25 = vpop.permute.xlu1 %321  ;;  %v306_v26 = vpop.permute.xlu0 %305 }
  0xa6   : > { %v323_v30 = vmul.f32 %v537_v13, %v322_v25  ;;  %v307_v39 = vmul.f32 %v306_v26, %v293_v10 }
  0xa8   : > { %v324_v37 = vadd.f32 %v323_v30, %v303_v33 }
  0xa9   : > { %v330_v27 = vpop.permute.xlu1 %329  ;;  %v326_v28 = vpop.permute.xlu0 %325 }
  0xaa   : > { %v327_v35 = vmul.f32 %v537_v13, %v326_v28  ;;  %v331_v38 = vmul.f32 %v537_v13, %v330_v27 }
  0xac   : > { %v328_v47 = vadd.f32 %v327_v35, %v307_v39  ;;  %v332_v48 = vadd.f32 %v331_v38, %v311_v43 }
  0xad   : > { %v346_v31 = vpop.permute.xlu1 %345  ;;  %v342_v32 = vpop.permute.xlu0 %341 }
  0xae   : > { %v343_v34 = vmul.f32 %v539_v14, %v342_v32  ;;  %v347_v40 = vmul.f32 %v539_v14, %v346_v31 }
  0xb0   : > { %v344_v44 = vadd.f32 %v343_v34, %v324_v37  ;;  %v348_v50 = vadd.f32 %v347_v40, %v328_v47 }
  0xb1   : > { %v362_v41 = vpop.permute.xlu1 %361  ;;  %v350_v42 = vpop.permute.xlu0 %349 }
  0xb2   : > { %v363_v45 = vmul.f32 %v541_v18, %v362_v41  ;;  %v351_v46 = vmul.f32 %v539_v14, %v350_v42 }
  0xb4   : > { %v364_v49 = vadd.f32 %v363_v45, %v344_v44  ;;  %v352_v54 = vadd.f32 %v351_v46, %v332_v48 }
  0xb5   : > { %v370_v51 = vpop.permute.xlu1 %369  ;;  %v366_v52 = vpop.permute.xlu0 %365 }
  0xb6   : > { %v382_v53 = vsel %vm381_vm0, %v364_v49, 0.0  ;;  %v371_v55 = vmul.f32 %v541_v18, %v370_v51  ;;  %v367_v56 = vmul.f32 %v541_v18, %v366_v52 }
  0xb7   : > { %543 = vst [vmem:[%s842_s21 + $0x8] sm:$0xff] %v382_v53 }
  0xb8   : > { %v372_v57 = vadd.f32 %v371_v55, %v352_v54  ;;  %v368_v58 = vadd.f32 %v367_v56, %v348_v50 }
  0xba   : > { %v394_v59 = vsel %vm393_vm1, %v372_v57, 0.0  ;;  %v388_v60 = vsel %vm387_vm2, %v368_v58, 0.0 }
  0xbb   : > { %545 = vst [vmem:[%s842_s21 + $0x18] sm:$0xff] %v394_v59  ;;  %544 = vst [vmem:[%s842_s21 + $0x10] sm:$0xff] %v388_v60 }
  0xbc   : > { %641 = shalt.err (!%p638_p7)
}
  0xbd   : > { %s642_s22 = scalar_lea.hbm %s854_s30, 512  ;;  %s646_s18 = scalar_lea.hbm %s914_s2, 2048 }
  0xbe   : > { %p643_p10 = scmp.ne.s32.totalorder %s854_s30, %s642_s22  ;;  %p647_p13 = scmp.lt.u32.totalorder %s854_s30, %s914_s2 }
  0xbf   : > { %p648_p0 = scmp.lt.u32.totalorder %s646_s18, %s642_s22  ;;  %p650_p2 = scmp.lt.u32.totalorder %s642_s22, %s854_s30 }
  0xc0   : > { %p644_p11 = pnand %p643_p10, %p806_p8 }
  0xc1   : > { %p649_p1 = por %p648_p0, %p647_p13 }
  0xc2   : > { %p645_p12 = pneg %p644_p11 }
  0xc3   : > { %p651_p3 = por %p650_p2, %p649_p1 }
  0xc5   : > { %p652_p4 = pnand %p651_p3, %p645_p12 }
  0xc7   : > { %655 = shalt.err (!%p652_p4)
}
  0xc8   : > { %s728_s26 = smov 128   ;;  %s729_s13 = smov 256  }
  0xc9   : > { %s730_s12 = smov 8  }
  0xca   : > { %551 = dma.vmem_to_hbm [thread:$0]  (%p806_p8), %s848_s27, 512, %s854_s30, %s860_s3, %s728_s26, %s729_s13, %s730_s12  }
  0xcb PF: > { %p557_p5 = scmp.ge.s32.totalorder %s722_s16, 2  ;;  %s430_s29 = sand.u32 1, %s694_s9  }
  0xcc   : > { %s431_s4 = scalar_lea.sflag [#allocation5], %s430_s29 }
  0xcd   : > { %p554_p6 = pnand %p557_p5, %p810_p9 }
  0xcf   : > { %689 = dma.done.wait (!%p554_p6), %s431_s4, 512  }
  0xd0   : > { %691 = vsyncadd (!%p554_p6), %s431_s4, 4294966784  ;;  %s15_s16 = sadd.s32 1, %s722_s16   ;;  %s918_s9 = smov %s698_s10 }
  0xd1   : > { %p12_p7 = scmp.ge.s32.totalorder %s15_s16, 6   ;;  %s919_s10 = smov %s702_s11 }
  0xd2   : > { %s920_s11 = smov %s818_s28  ;;  %s921_s12 = smov %s714_s14 }
  0xd3   : > { %s922_s13 = smov %s718_s15  ;;  %s923_s14 = smov %s926_s19 }
  0xd4   : > { %s924_s15 = smov %s930_s20  ;;  %14 = sbr.rel (!%p12_p7) target bundleno = 5 (0x5), region = 161 }
  0xdb   :  { %436 = vsyncpa [#allocation5], 1 }
  0xdc   :  { %438 = vsyncpa [#allocation5 + $0x1], 1 }

</bundles_post_ra>
